<compile_context>
chip_gen: v7x
topology: tpu7x:2x2x1
jax: 0.10.0
libtpu: 0.0.40
codegen_flags: <defaults>
</compile_context>

<pallas_src>
import functools

import jax
import jax.numpy as jnp
from jax import lax
from jax.experimental import pallas as pl
from jax.experimental.pallas import tpu as pltpu

_EPS = 1e-6          # F.pairwise_distance default eps (added to the difference)
_NEG_BIG = -1.0e30   # "minus infinity": unlabeled / padded anchor rows never fire
_FAR_SQ = 1.0e30     # added to ||p||^2 of padded positive columns -> dist ~1e15 -> hinge 0
_VMEM_BUDGET = 40 * 1024 * 1024   # conservative: leaves headroom on v7x's 64 MiB/TC


def _round_up(x, m):
    return (x + m - 1) // m * m


def _npairs_kernel(ae_ref, p_ref, sqp_ref, sqa_ref, post_ref, out_ref, acc_ref,
                   *, tm, tn):
    i = pl.program_id(0)
    j = pl.program_id(1)

    @pl.when(j == 0)
    def _init():
        acc_ref[...] = jnp.zeros_like(acc_ref)

    # ||a_i - p_j||^2 = ||a_i||^2 + ||p_j||^2 - 2 a_i . p_j   (MXU, no transpose)
    cross = lax.dot_general(ae_ref[...], p_ref[...],
                            dimension_numbers=(((1,), (1,)), ((), ())),
                            preferred_element_type=jnp.float32)        # (tm, tn)
    dist_sq = sqa_ref[...] + sqp_ref[...] - 2.0 * cross
    dist = jnp.sqrt(jnp.maximum(dist_sq, 0.0))
    # post_ref already holds pos_dist + margin (labeled rows) or -1e30 (others):
    # no per-tile label mask, no per-tile margin add.
    hinge = jnp.maximum(post_ref[...] - dist, 0.0)                     # (tm, tn)

    row0 = i * tm
    col0 = j * tn
    touches_diag = jnp.logical_and(row0 < col0 + tn, col0 < row0 + tm)

    @pl.when(touches_diag)
    def _acc_masked():
        # Exact removal of the j == i terms, only in the tile that holds them.
        gr = row0 + lax.broadcasted_iota(jnp.int32, (tm, tn), 0)
        gc = col0 + lax.broadcasted_iota(jnp.int32, (tm, tn), 1)
        acc_ref[...] += jnp.where(gr == gc, 0.0, hinge)

    @pl.when(jnp.logical_not(touches_diag))
    def _acc():
        acc_ref[...] += hinge

    @pl.when(j == pl.num_programs(1) - 1)
    def _finalize():
        # One cross-lane reduce per row tile; lane-dense full-vreg store.
        out_ref[...] = jnp.zeros_like(out_ref) + jnp.sum(acc_ref[...])


def npairs_loss(anchor, positive, labels, margin=1.0, use_bf16_matmul=False):
    """anchor, positive: (B, D) float; labels: (B,) int. Returns scalar f32."""
    B, D = anchor.shape
    anchor = anchor.astype(jnp.float32)
    positive = positive.astype(jnp.float32)
    labels = labels.reshape(B)

    ae = anchor + _EPS                  # eps folded into the anchor (applies to every pair)
    d_pad = _round_up(D, 128)           # lane-aligned contraction dim

    # ---- tile selection (128-aligned; fit double-buffered blocks in VMEM budget) ----
    b_align = _round_up(B, 128)
    tm = min(512, b_align)              # big anchor tile -> fewer HBM passes over positive
    tn = min(256, b_align)
    in_bytes = 2 if use_bf16_matmul else 4

    def _blk_bytes(tm_, tn_):
        return (2 * (tm_ + tn_) * d_pad * in_bytes   # double-buffered (t, D) blocks
                + 2 * (2 * tm_ + tn_) * 4            # sq_a, pos_term, sq_p blocks
                + tm_ * tn_ * 4                      # hinge accumulator scratch
                + 2 * 8 * 128 * 4)                   # output block

    while _blk_bytes(tm, tn) > _VMEM_BUDGET and tm > 128:
        tm = max(128, tm // 2)
    while _blk_bytes(tm, tn) > _VMEM_BUDGET and tn > 128:
        tn = max(128, tn // 2)
    # TODO(synk): for very large D (d_pad > ~16K even at 128x128 tiles) add a third
    # "arbitrary" grid axis over D with a (tm, tn) dist_sq accumulator scratch.

    bm = _round_up(B, tm)
    bn = _round_up(B, tn)
    gm, gn = bm // tm, bn // tn

    # ---- host-side precompute, O(B*D) ----
    # Direct positive-pair distance (exact, no norm-expansion cancellation);
    # fold margin in and mask unlabeled rows with -1e30.
    pos_dist = jnp.sqrt(jnp.sum((ae - positive) ** 2, axis=-1))          # (B,)
    pos_term = jnp.where(labels == 1, pos_dist + jnp.float32(margin),
                         jnp.float32(_NEG_BIG))

    ae_p = jnp.zeros((bm, d_pad), jnp.float32).at[:B, :D].set(ae)
    pos_p = jnp.zeros((bn, d_pad), jnp.float32).at[:B, :D].set(positive)
    sq_a = jnp.sum(ae_p * ae_p, axis=-1, keepdims=True)                  # (bm, 1)
    sq_p = jnp.sum(pos_p * pos_p, axis=-1).reshape(1, bn)                # (1, bn)
    if bn > B:
        sq_p = sq_p.at[0, B:].set(_FAR_SQ)   # padded positives sit "infinitely" far away
    pos_term_p = jnp.full((bm, 1), _NEG_BIG, jnp.float32).at[:B, 0].set(pos_term)

    if use_bf16_matmul:
        # MXU operands only; sq_a / sq_p / pos_term and the hinge math stay f32.
        ae_p = ae_p.astype(jnp.bfloat16)
        pos_p = pos_p.astype(jnp.bfloat16)

    # TODO(synk): if labels are sparse, gather the labeled anchor rows here so the
    # row grid (and its DMA + MXU cost) covers positives only.

    kernel = functools.partial(_npairs_kernel, tm=tm, tn=tn)

    partials = pl.pallas_call(
        kernel,
        out_shape=jax.ShapeDtypeStruct((gm, 8, 128), jnp.float32),
        grid_spec=pltpu.PrefetchScalarGridSpec(
            num_scalar_prefetch=0,
            grid=(gm, gn),
            in_specs=[
                pl.BlockSpec((tm, d_pad), lambda i, j: (i, 0)),   # anchor + eps (rows)
                pl.BlockSpec((tn, d_pad), lambda i, j: (j, 0)),   # positive (cols)
                pl.BlockSpec((1, tn), lambda i, j: (0, j)),       # ||p||^2 per column
                pl.BlockSpec((tm, 1), lambda i, j: (i, 0)),       # ||anchor+eps||^2 per row
                pl.BlockSpec((tm, 1), lambda i, j: (i, 0)),       # pos_dist+margin (masked)
            ],
            out_specs=pl.BlockSpec((1, 8, 128), lambda i, j: (i, 0, 0)),
            scratch_shapes=[pltpu.VMEM((tm, tn), jnp.float32)],   # hinge accumulator
        ),
        compiler_params=pltpu.CompilerParams(
            dimension_semantics=("parallel", "arbitrary"),
            vmem_limit_bytes=int(min(_blk_bytes(tm, tn) + (4 << 20), 100 << 20)),
        ),
    )(ae_p, pos_p, sq_p, sq_a, pos_term_p)

    total = jnp.sum(partials[:, 0, 0])
    n_pos = jnp.sum((labels == 1).astype(jnp.float32))
    count = n_pos * jnp.float32(B - 1)
    return jnp.where(count > 0, total / count, jnp.float32(0.0))


def _reference(anchor, positive, labels, margin=1.0):
    """Pure-JAX reference mirroring the PyTorch double loop (vectorized)."""
    diff = anchor[:, None, :] - positive[None, :, :] + _EPS          # (B, B, D)
    dist = jnp.sqrt(jnp.sum(diff * diff, axis=-1))                   # (B, B)
    B = anchor.shape[0]
    pos_dist = jnp.diagonal(dist)[:, None]                           # (B, 1)
    eye = jnp.eye(B, dtype=bool)
    hinge = jnp.maximum(pos_dist - dist + margin, 0.0)
    pos_mask = (labels == 1).astype(jnp.float32)[:, None]
    loss_sum = jnp.sum(hinge * (~eye) * pos_mask)
    count = jnp.sum(pos_mask) * (B - 1)
    return jnp.where(count > 0, loss_sum / count, 0.0)


if __name__ == "__main__":
    key = jax.random.PRNGKey(0)
    k1, k2, k3 = jax.random.split(key, 3)

    B, D = 8, 32
    anchor = jax.random.normal(k1, (B, D), dtype=jnp.float32)
    positive = jax.random.normal(k2, (B, D), dtype=jnp.float32)
    labels = jax.random.bernoulli(k3, 0.5, (B,)).astype(jnp.int32)

    out = npairs_loss(anchor, positive, labels, margin=1.0)
    out = jax.block_until_ready(out)

    ref = jax.block_until_ready(_reference(anchor, positive, labels, margin=1.0))
    assert jnp.allclose(out, ref, rtol=1e-4, atol=1e-4), (out, ref)

    print("KERNEL_OK")
</pallas_src>

<mosaic_0001>
module attributes {stable_mosaic.version = 11 : i64} {
  func.func @_npairs_kernel(%arg0: i32, %arg1: i32, %arg2: memref<128x128xf32, #tpu.memory_space<vmem>>, %arg3: memref<128x128xf32, #tpu.memory_space<vmem>>, %arg4: memref<1x128xf32, #tpu.memory_space<vmem>>, %arg5: memref<128x1xf32, #tpu.memory_space<vmem>>, %arg6: memref<128x1xf32, #tpu.memory_space<vmem>>, %arg7: memref<1x8x128xf32, #tpu.memory_space<vmem>>, %arg8: memref<128x128xf32, #tpu.memory_space<vmem>>) attributes {dimension_semantics = [#tpu.dimension_semantics<parallel>, #tpu.dimension_semantics<arbitrary>], iteration_bounds = array<i64: 1, 1>, scalar_prefetch = 0 : i64, scratch_operands = 1 : i64, tpu.core_type = #tpu.core_type<tc>, window_params = [{transform_indices = @transform_0, window_bounds = array<i64: 128, 128>}, {transform_indices = @transform_1, window_bounds = array<i64: 128, 128>}, {transform_indices = @transform_2, window_bounds = array<i64: 1, 128>}, {transform_indices = @transform_3, window_bounds = array<i64: 128, 1>}, {transform_indices = @transform_4, window_bounds = array<i64: 128, 1>}, {transform_indices = @transform_5, window_bounds = array<i64: 1, 8, 128>}]} {
    %c0_i32 = arith.constant 0 : i32
    %0 = arith.cmpi eq, %arg1, %c0_i32 : i32
    %1 = arith.extui %0 : i1 to i32
    %c0_i32_0 = arith.constant 0 : i32
    %2 = arith.cmpi ne, %1, %c0_i32_0 : i32
    scf.if %2 {
      %cst_20 = arith.constant 0.000000e+00 : f32
      %37 = vector.broadcast %cst_20 : f32 to vector<128x128xf32>
      %c0_21 = arith.constant 0 : index
      %c0_22 = arith.constant 0 : index
      %38 = vector.load %arg8[%c0_21, %c0_22] : memref<128x128xf32, #tpu.memory_space<vmem>>, vector<128x128xf32>
      tpu.vector_store %arg8[%c0_21, %c0_22], %37 {strides = array<i32>} : memref<128x128xf32, #tpu.memory_space<vmem>>, vector<128x128xf32>,
    } else {
    }
    %c0 = arith.constant 0 : index
    %c0_1 = arith.constant 0 : index
    %3 = vector.load %arg2[%c0, %c0_1] : memref<128x128xf32, #tpu.memory_space<vmem>>, vector<128x128xf32>
    %c0_2 = arith.constant 0 : index
    %c0_3 = arith.constant 0 : index
    %4 = vector.load %arg3[%c0_2, %c0_3] : memref<128x128xf32, #tpu.memory_space<vmem>>, vector<128x128xf32>
    %cst = arith.constant dense<0.000000e+00> : vector<128x128xf32>
    %5 = tpu.matmul %3, %4, %cst {dimension_numbers = #tpu.dot_dimension_numbers<[1], [1], [0], [0], [0, 0, 1, 0], [], []>} : vector<128x128xf32>, vector<128x128xf32>, vector<128x128xf32> -> vector<128x128xf32>
    %c0_4 = arith.constant 0 : index
    %c0_5 = arith.constant 0 : index
    %6 = vector.load %arg5[%c0_4, %c0_5] : memref<128x1xf32, #tpu.memory_space<vmem>>, vector<128x1xf32>
    %c0_6 = arith.constant 0 : index
    %c0_7 = arith.constant 0 : index
    %7 = vector.load %arg4[%c0_6, %c0_7] : memref<1x128xf32, #tpu.memory_space<vmem>>, vector<1x128xf32>
    %8 = vector.broadcast %6 : vector<128x1xf32> to vector<128x128xf32>
    %9 = vector.broadcast %7 : vector<1x128xf32> to vector<128x128xf32>
    %10 = arith.addf %8, %9 : vector<128x128xf32>
    %cst_8 = arith.constant 2.000000e+00 : f32
    %11 = vector.broadcast %cst_8 : f32 to vector<128x128xf32>
    %12 = arith.mulf %11, %5 : vector<128x128xf32>
    %13 = arith.subf %10, %12 : vector<128x128xf32>
    %cst_9 = arith.constant 0.000000e+00 : f32
    %14 = vector.broadcast %cst_9 : f32 to vector<128x128xf32>
    %15 = arith.maximumf %13, %14 : vector<128x128xf32>
    %16 = math.sqrt %15 : vector<128x128xf32>
    %c0_10 = arith.constant 0 : index
    %c0_11 = arith.constant 0 : index
    %17 = vector.load %arg6[%c0_10, %c0_11] : memref<128x1xf32, #tpu.memory_space<vmem>>, vector<128x1xf32>
    %18 = vector.broadcast %17 : vector<128x1xf32> to vector<128x128xf32>
    %19 = arith.subf %18, %16 : vector<128x128xf32>
    %cst_12 = arith.constant 0.000000e+00 : f32
    %20 = vector.broadcast %cst_12 : f32 to vector<128x128xf32>
    %21 = arith.maximumf %19, %20 : vector<128x128xf32>
    %c128_i32 = arith.constant 128 : i32
    %22 = arith.muli %arg0, %c128_i32 : i32
    %c128_i32_13 = arith.constant 128 : i32
    %23 = arith.muli %arg1, %c128_i32_13 : i32
    %c128_i32_14 = arith.constant 128 : i32
    %24 = arith.addi %23, %c128_i32_14 : i32
    %25 = arith.cmpi slt, %22, %24 : i32
    %c128_i32_15 = arith.constant 128 : i32
    %26 = arith.addi %22, %c128_i32_15 : i32
    %27 = arith.cmpi slt, %23, %26 : i32
    %28 = arith.andi %25, %27 : i1
    %29 = arith.extui %28 : i1 to i32
    %c0_i32_16 = arith.constant 0 : i32
    %30 = arith.cmpi ne, %29, %c0_i32_16 : i32
    scf.if %30 {
      %37 = tpu.iota {dimensions = array<i32: 0>} : vector<128x128xi32>
      %38 = vector.broadcast %22 : i32 to vector<128x128xi32>
      %39 = arith.addi %38, %37 : vector<128x128xi32>
      %40 = tpu.iota {dimensions = array<i32: 1>} : vector<128x128xi32>
      %41 = vector.broadcast %23 : i32 to vector<128x128xi32>
      %42 = arith.addi %41, %40 : vector<128x128xi32>
      %c0_20 = arith.constant 0 : index
      %c0_21 = arith.constant 0 : index
      %43 = vector.load %arg8[%c0_20, %c0_21] : memref<128x128xf32, #tpu.memory_space<vmem>>, vector<128x128xf32>
      %44 = arith.cmpi eq, %39, %42 : vector<128x128xi32>
      %cst_22 = arith.constant 0.000000e+00 : f32
      %45 = vector.broadcast %cst_22 : f32 to vector<128x128xf32>
      %46 = arith.select %44, %45, %21 : vector<128x128xi1>, vector<128x128xf32>
      %47 = arith.addf %43, %46 : vector<128x128xf32>
      %c0_23 = arith.constant 0 : index
      %c0_24 = arith.constant 0 : index
      %48 = vector.load %arg8[%c0_23, %c0_24] : memref<128x128xf32, #tpu.memory_space<vmem>>, vector<128x128xf32>
      tpu.vector_store %arg8[%c0_23, %c0_24], %47 {strides = array<i32>} : memref<128x128xf32, #tpu.memory_space<vmem>>, vector<128x128xf32>,
    } else {
    }
    %true = arith.constant true
    %31 = arith.xori %28, %true : i1
    %32 = arith.extui %31 : i1 to i32
    %c0_i32_17 = arith.constant 0 : i32
    %33 = arith.cmpi ne, %32, %c0_i32_17 : i32
    scf.if %33 {
      %c0_20 = arith.constant 0 : index
      %c0_21 = arith.constant 0 : index
      %37 = vector.load %arg8[%c0_20, %c0_21] : memref<128x128xf32, #tpu.memory_space<vmem>>, vector<128x128xf32>
      %38 = arith.addf %37, %21 : vector<128x128xf32>
      %c0_22 = arith.constant 0 : index
      %c0_23 = arith.constant 0 : index
      %39 = vector.load %arg8[%c0_22, %c0_23] : memref<128x128xf32, #tpu.memory_space<vmem>>, vector<128x128xf32>
      tpu.vector_store %arg8[%c0_22, %c0_23], %38 {strides = array<i32>} : memref<128x128xf32, #tpu.memory_space<vmem>>, vector<128x128xf32>,
    } else {
    }
    %c0_i32_18 = arith.constant 0 : i32
    %34 = arith.cmpi eq, %arg1, %c0_i32_18 : i32
    %35 = arith.extui %34 : i1 to i32
    %c0_i32_19 = arith.constant 0 : i32
    %36 = arith.cmpi ne, %35, %c0_i32_19 : i32
    scf.if %36 {
      %cst_20 = arith.constant 0.000000e+00 : f32
      %37 = vector.broadcast %cst_20 : f32 to vector<1x8x128xf32>
      %c0_21 = arith.constant 0 : index
      %c0_22 = arith.constant 0 : index
      %38 = vector.load %arg8[%c0_21, %c0_22] : memref<128x128xf32, #tpu.memory_space<vmem>>, vector<128x128xf32>
      %39 = vector.shape_cast %38 : vector<128x128xf32> to vector<1x128x128xf32>
      %cst_23 = arith.constant dense<0.000000e+00> : vector<1xf32>
      %40 = vector.multi_reduction <add>, %39, %cst_23 [1, 2] : vector<1x128x128xf32> to vector<1xf32>
      %41 = vector.shape_cast %40 : vector<1xf32> to vector<1x1x1xf32>
      %42 = vector.extract %41[0, 0, 0] : f32 from vector<1x1x1xf32>
      %43 = vector.broadcast %42 : f32 to vector<1x8x128xf32>
      %44 = arith.addf %37, %43 : vector<1x8x128xf32>
      %c0_24 = arith.constant 0 : index
      %c0_25 = arith.constant 0 : index
      %c0_26 = arith.constant 0 : index
      %45 = vector.load %arg7[%c0_24, %c0_25, %c0_26] : memref<1x8x128xf32, #tpu.memory_space<vmem>>, vector<1x8x128xf32>
      tpu.vector_store %arg7[%c0_24, %c0_25, %c0_26], %44 {strides = array<i32>} : memref<1x8x128xf32, #tpu.memory_space<vmem>>, vector<1x8x128xf32>,
    } else {
    }
    return
  }
  func.func @transform_0(%arg0: i32, %arg1: i32) -> (i32, i32) {
    %c0_i32 = arith.constant 0 : i32
    %c0_i32_0 = arith.constant 0 : i32
    return %arg0, %c0_i32 : i32, i32
  }
  func.func @transform_1(%arg0: i32, %arg1: i32) -> (i32, i32) {
    %c0_i32 = arith.constant 0 : i32
    %c0_i32_0 = arith.constant 0 : i32
    return %arg1, %c0_i32 : i32, i32
  }
  func.func @transform_2(%arg0: i32, %arg1: i32) -> (i32, i32) {
    %c0_i32 = arith.constant 0 : i32
    %c0_i32_0 = arith.constant 0 : i32
    return %c0_i32, %arg1 : i32, i32
  }
  func.func @transform_3(%arg0: i32, %arg1: i32) -> (i32, i32) {
    %c0_i32 = arith.constant 0 : i32
    %c0_i32_0 = arith.constant 0 : i32
    return %arg0, %c0_i32 : i32, i32
  }
  func.func @transform_4(%arg0: i32, %arg1: i32) -> (i32, i32) {
    %c0_i32 = arith.constant 0 : i32
    %c0_i32_0 = arith.constant 0 : i32
    return %arg0, %c0_i32 : i32, i32
  }
  func.func @transform_5(%arg0: i32, %arg1: i32) -> (i32, i32, i32) {
    %c0_i32 = arith.constant 0 : i32
    %c0_i32_0 = arith.constant 0 : i32
    %c0_i32_1 = arith.constant 0 : i32
    return %arg0, %c0_i32, %c0_i32_0 : i32, i32, i32
  }
}

</mosaic_0001>

<bundles_post_ra>
// kernel: tpu_custom_call.1
= control target key start
LH: loop header
LB: loop body
LE: loop exit
PB: predicated region body
PF: predicated region fallthrough
CT: control target
= control target key end

     0   :  { %v1063_v5 = vmov 0   ;;  %s1607_s0 = inlined_call_operand.vmem [shape: f32[128,128], index: 0, kind: input, shape index: {}]   ;;  %s1608_s1 = inlined_call_operand.vmem [shape: f32[128,128], index: 1, kind: input, shape index: {}]   ;;  %s1609_s2 = inlined_call_operand.vmem [shape: f32[1,128], index: 2, kind: input, shape index: {}]   ;;  %s1610_s3 = inlined_call_operand.vmem [shape: f32[128,1], index: 3, kind: input, shape index: {}]   ;;  %s1611_s4 = inlined_call_operand.vmem [shape: f32[128,1], index: 4, kind: input, shape index: {}]   ;;  %s1612_s5 = inlined_call_operand.hbm [shape: f32[1,8,128], index: 5, kind: output, shape index: {}]  }
   0x1   :  { %v57_v0 = vld [vmem:[%s1608_s1] sm:$0xff]  ;;  %v58_v1 = vld [vmem:[%s1608_s1 + $0x8] sm:$0xff]  ;;  %v59_v2 = vld [vmem:[%s1608_s1 + $0x10] sm:$0xff]  ;;  %1005 = vset.pattern.permute.xlu0 %v1063_v5  ;;  %1006 = vset.pattern.permute.xlu1 %v1063_v5 }
   0x2   :  { %v953_v3 = vpack.c.bf16 %v58_v1, %v57_v0  ;;  %v60_v4 = vld [vmem:[%s1608_s1 + $0x18] sm:$0xff]  ;;  %v41_v7 = vld [vmem:[%s1607_s0] sm:$0xff]  ;;  %v62_v10 = vld [vmem:[%s1608_s1 + $0x28] sm:$0xff] }
   0x3   :  { %v957_v6 = vpack.c.bf16 %v60_v4, %v59_v2  ;;  %v49_v8 = vld [vmem:[%s1607_s0 + $0x40] sm:$0xff]  ;;  %929 = vmatprep.mubr.f32.mxu0 %v41_v7  ;;  %v220_v13 = vld [vmem:[%s1610_s3 + $0x10] sm:$0xff]  ;;  %v219_v14 = vld [vmem:[%s1610_s3 + $0x8] sm:$0xff] }
   0x4   :  { %954 = vmatprep.subr.bf16.mxu0 %v953_v3  ;;  %985 = vmatprep.subr.bf16.mxu1 %v953_v3  ;;  %v61_v9 = vld [vmem:[%s1608_s1 + $0x20] sm:$0xff]  ;;  %v63_v15 = vld [vmem:[%s1608_s1 + $0x30] sm:$0xff]  ;;  %v64_v16 = vld [vmem:[%s1608_s1 + $0x38] sm:$0xff] }
   0x5   :  { %956 = vmatpush3.bf16.xpose.msra.mxu0 %v953_v3  ;;  %993 = vmatpush3.bf16.xpose.msra.mxu1 %v953_v3  ;;  %v961_v11 = vpack.c.bf16 %v62_v10, %v61_v9  ;;  %v218_v12 = vld [vmem:[%s1610_s3] sm:$0xff]  ;;  %v221_v17 = vld [vmem:[%s1610_s3 + $0x18] sm:$0xff]  ;;  %v965_v19 = vpack.c.bf16 %v64_v16, %v63_v15  ;;  %v223_v20 = vld [vmem:[%s1610_s3 + $0x28] sm:$0xff] }
   0x6   :  { %958 = vmatprep.subr.bf16.mxu0 %v957_v6  ;;  %986 = vmatprep.subr.bf16.mxu1 %v957_v6  ;;  %v222_v18 = vld [vmem:[%s1610_s3 + $0x20] sm:$0xff]  ;;  %v224_v21 = vld [vmem:[%s1610_s3 + $0x30] sm:$0xff] }
   0x7   :  { %941 = vmatprep.mubr.f32.mxu1 %v49_v8  ;;  %237 = vperm.xlu0 %1005, %v218_v12  }
   0x8   :  { %247 = vperm.xlu1 %1006, %v220_v13  }
   0xb   :  { %242 = vperm.xlu0 %1005, %v219_v14  }
   0xc   :  { %252 = vperm.xlu1 %1006, %v221_v17  }
   0xd   :  { %960 = vmatpush3.bf16.xpose.msra.mxu0 %v957_v6  ;;  %994 = vmatpush3.bf16.xpose.msra.mxu1 %v957_v6 }
   0xe   :  { %962 = vmatprep.subr.bf16.mxu0 %v961_v11  ;;  %987 = vmatprep.subr.bf16.mxu1 %v961_v11 }
   0xf   :  { %257 = vperm.xlu0 %1005, %v222_v18  }
  0x15   :  { %964 = vmatpush3.bf16.xpose.msra.mxu0 %v961_v11  ;;  %995 = vmatpush3.bf16.xpose.msra.mxu1 %v961_v11 }
  0x16   :  { %966 = vmatprep.subr.bf16.mxu0 %v965_v19  ;;  %988 = vmatprep.subr.bf16.mxu1 %v965_v19 }
  0x17   :  { %10 = vsyncpa [#allocation4], 0  ;;  %v65_v22 = vld [vmem:[%s1608_s1 + $0x40] sm:$0xff]  ;;  %v66_v23 = vld [vmem:[%s1608_s1 + $0x48] sm:$0xff]  ;;  %262 = vperm.xlu1 %1006, %v223_v20   ;;  %267 = vperm.xlu0 %1005, %v224_v21  }
  0x18   :  { %v225_v24 = vld [vmem:[%s1610_s3 + $0x38] sm:$0xff]  ;;  %v226_v25 = vld [vmem:[%s1610_s3 + $0x40] sm:$0xff]  ;;  %v969_v26 = vpack.c.bf16 %v66_v23, %v65_v22  ;;  %v227_v27 = vld [vmem:[%s1610_s3 + $0x48] sm:$0xff] }
  0x19   :  { %v228_v28 = vld [vmem:[%s1610_s3 + $0x50] sm:$0xff]  ;;  %v68_v30 = vld [vmem:[%s1608_s1 + $0x58] sm:$0xff]  ;;  %v497_v32 = vld [vmem:[%s1611_s4] sm:$0xff] }
  0x1a   :  { %v67_v29 = vld [vmem:[%s1608_s1 + $0x50] sm:$0xff]  ;;  %v229_v31 = vld [vmem:[%s1610_s3 + $0x58] sm:$0xff]  ;;  %v498_v34 = vld [vmem:[%s1611_s4 + $0x8] sm:$0xff] }
  0x1b   :  { %272 = vperm.xlu1 %1006, %v225_v24   ;;  %277 = vperm.xlu0 %1005, %v226_v25   ;;  %v973_v33 = vpack.c.bf16 %v68_v30, %v67_v29  ;;  %v230_v35 = vld [vmem:[%s1610_s3 + $0x60] sm:$0xff]  ;;  %v70_v37 = vld [vmem:[%s1608_s1 + $0x68] sm:$0xff]  ;;  %v499_v38 = vld [vmem:[%s1611_s4 + $0x10] sm:$0xff] }
  0x1c   :  { %v69_v36 = vld [vmem:[%s1608_s1 + $0x60] sm:$0xff]  ;;  %v231_v39 = vld [vmem:[%s1610_s3 + $0x68] sm:$0xff]  ;;  %v500_v41 = vld [vmem:[%s1611_s4 + $0x18] sm:$0xff] }
  0x1d   :  { %968 = vmatpush3.bf16.xpose.msra.mxu0 %v965_v19  ;;  %996 = vmatpush3.bf16.xpose.msra.mxu1 %v965_v19  ;;  %v977_v40 = vpack.c.bf16 %v70_v37, %v69_v36  ;;  %v232_v42 = vld [vmem:[%s1610_s3 + $0x70] sm:$0xff]  ;;  %v72_v44 = vld [vmem:[%s1608_s1 + $0x78] sm:$0xff]  ;;  %v501_v45 = vld [vmem:[%s1611_s4 + $0x20] sm:$0xff] }
  0x1e   :  { %970 = vmatprep.subr.bf16.mxu0 %v969_v26  ;;  %989 = vmatprep.subr.bf16.mxu1 %v969_v26  ;;  %v71_v43 = vld [vmem:[%s1608_s1 + $0x70] sm:$0xff]  ;;  %v233_v46 = vld [vmem:[%s1610_s3 + $0x78] sm:$0xff]  ;;  %v502_v48 = vld [vmem:[%s1611_s4 + $0x28] sm:$0xff] }
  0x1f   :  { %282 = vperm.xlu1 %1006, %v227_v27   ;;  %287 = vperm.xlu0 %1005, %v228_v28   ;;  %v981_v47 = vpack.c.bf16 %v72_v44, %v71_v43  ;;  %v503_v49 = vld [vmem:[%s1611_s4 + $0x30] sm:$0xff]  ;;  %v504_v50 = vld [vmem:[%s1611_s4 + $0x38] sm:$0xff]  ;;  %v505_v51 = vld [vmem:[%s1611_s4 + $0x40] sm:$0xff] }
  0x20   :  { %v506_v52 = vld [vmem:[%s1611_s4 + $0x48] sm:$0xff]  ;;  %v507_v53 = vld [vmem:[%s1611_s4 + $0x50] sm:$0xff]  ;;  %v508_v54 = vld [vmem:[%s1611_s4 + $0x58] sm:$0xff] }
  0x21   :  { %v42_v55 = vld [vmem:[%s1607_s0 + $0x8] sm:$0xff]  ;;  %v43_v57 = vld [vmem:[%s1607_s0 + $0x10] sm:$0xff]  ;;  %v509_v59 = vld [vmem:[%s1611_s4 + $0x60] sm:$0xff] }
  0x22   :  { %v50_v56 = vld [vmem:[%s1607_s0 + $0x48] sm:$0xff]  ;;  %v51_v58 = vld [vmem:[%s1607_s0 + $0x50] sm:$0xff]  ;;  %v44_v61 = vld [vmem:[%s1607_s0 + $0x18] sm:$0xff] }
  0x23   :  { %292 = vperm.xlu1 %1006, %v229_v31   ;;  %515 = vperm.xlu0 %1005, %v497_v32   ;;  %v510_v60 = vld [vmem:[%s1611_s4 + $0x68] sm:$0xff]  ;;  %v52_v62 = vld [vmem:[%s1607_s0 + $0x58] sm:$0xff]  ;;  %v45_v63 = vld [vmem:[%s1607_s0 + $0x20] sm:$0xff] }
  0x24   :  { %v53_v0 = vld [vmem:[%s1607_s0 + $0x60] sm:$0xff]  ;;  %v511_v1 = vld [vmem:[%s1611_s4 + $0x70] sm:$0xff]  ;;  %v512_v2 = vld [vmem:[%s1611_s4 + $0x78] sm:$0xff] }
  0x25   :  { %972 = vmatpush3.bf16.xpose.msra.mxu0 %v969_v26  ;;  %997 = vmatpush3.bf16.xpose.msra.mxu1 %v969_v26  ;;  %v46_v3 = vld [vmem:[%s1607_s0 + $0x28] sm:$0xff]  ;;  %v47_v5 = vld [vmem:[%s1607_s0 + $0x30] sm:$0xff]  ;;  %v48_v7 = vld [vmem:[%s1607_s0 + $0x38] sm:$0xff] }
  0x26   :  { %974 = vmatprep.subr.bf16.mxu0 %v973_v33  ;;  %990 = vmatprep.subr.bf16.mxu1 %v973_v33  ;;  %v54_v4 = vld [vmem:[%s1607_s0 + $0x68] sm:$0xff]  ;;  %v55_v6 = vld [vmem:[%s1607_s0 + $0x70] sm:$0xff]  ;;  %v56_v8 = vld [vmem:[%s1607_s0 + $0x78] sm:$0xff]  ;;  %s1064_s0 = smov [#allocation3]  }
  0x27   :  { %520 = vperm.xlu1 %1006, %v498_v34   ;;  %297 = vperm.xlu0 %1005, %v230_v35   ;;  %v1290_v19 = vld [vmem:[%s1609_s2] ss:$0 sm:$0xff]  ;;  %s856_s2 = sshll.u32 %s1064_s0, 4  ;;  %s857_s2 = int_to_ptr.vmem [resolvable:$true] %s856_s2 }
  0x28   :  { %s1039_s19 = scalar_lea.vmem %s857_s2, 128  ;;  %p1044_p1 = scmp.lt.s32.totalorder %s857_s2, %s857_s2 }
  0x29   :  { %p1040_p0 = scmp.ne.s32.totalorder %s857_s2, %s1039_s19  ;;  %p1045_p2 = scmp.lt.s32.totalorder %s1039_s19, %s1039_s19 }
  0x2b   :  { %525 = vperm.xlu1 %1006, %v499_v38   ;;  %302 = vperm.xlu0 %1005, %v231_v39   ;;  %p1046_p3 = por %p1045_p2, %p1044_p1 }
  0x2d   :  { %976 = vmatpush3.bf16.xpose.msra.mxu0 %v973_v33  ;;  %998 = vmatpush3.bf16.xpose.msra.mxu1 %v973_v33  ;;  %p1047_p4 = pnand %p1046_p3, %p1040_p0 }
  0x2e   :  { %978 = vmatprep.subr.bf16.mxu0 %v977_v40  ;;  %991 = vmatprep.subr.bf16.mxu1 %v977_v40 }
  0x2f   :  { %530 = vperm.xlu1 %1006, %v500_v41   ;;  %307 = vperm.xlu0 %1005, %v232_v42   ;;  %v635_v41 = vlaneseq }
  0x33   :  { %535 = vperm.xlu1 %1006, %v501_v45   ;;  %312 = vperm.xlu0 %1005, %v233_v46  }
  0x35   :  { %980 = vmatpush3.bf16.xpose.msra.mxu0 %v977_v40  ;;  %999 = vmatpush3.bf16.xpose.msra.mxu1 %v977_v40 }
  0x36   :  { %982 = vmatprep.subr.bf16.mxu0 %v981_v47  ;;  %992 = vmatprep.subr.bf16.mxu1 %v981_v47 }
  0x37   :  { %540 = vperm.xlu1 %1006, %v502_v48   ;;  %545 = vperm.xlu0 %1005, %v503_v49  }
  0x3b   :  { %550 = vperm.xlu1 %1006, %v504_v50   ;;  %555 = vperm.xlu0 %1005, %v505_v51  }
  0x3d   :  { %984 = vmatpush3.bf16.xpose.msra.mxu0 %v981_v47  ;;  %1000 = vmatpush3.bf16.xpose.msra.mxu1 %v981_v47 }
  0x3f   :  { %560 = vperm.xlu1 %1006, %v506_v52   ;;  %565 = vperm.xlu0 %1005, %v507_v53   ;;  %v1313_v52 = vshrl.u32 %v635_v41, 7 }
  0x43   :  { %570 = vperm.xlu1 %1006, %v508_v54   ;;  %575 = vperm.xlu0 %1005, %v509_v59  }
  0x44   :  { %930 = vmatmul.mubr.f32.vlgmr.msra.gmra.mrb[0].mxu0 %v42_v55  ;;  %942 = vmatmul.mubr.f32.vlgmr.msra.gmra.mrb[0].mxu1 %v50_v56 }
  0x45   :  { %932 = vmatprep.mubr.f32.mxu0 %v43_v57  ;;  %944 = vmatprep.mubr.f32.mxu1 %v51_v58 }
  0x47   :  { %580 = vperm.xlu1 %1006, %v510_v60   ;;  %585 = vperm.xlu0 %1005, %v511_v1  }
  0x48   :  { %933 = vmatmul.mubr.f32.gmra.mrb[2].mxu0 %v44_v61  ;;  %945 = vmatmul.mubr.f32.gmra.mrb[2].mxu1 %v52_v62 }
  0x49   :  { %935 = vmatprep.mubr.f32.mxu0 %v45_v63  ;;  %947 = vmatprep.mubr.f32.mxu1 %v53_v0 }
  0x4b   :  { %590 = vperm.xlu1 %1006, %v512_v2  }
  0x4c   :  { %936 = vmatmul.mubr.f32.gmra.mrb[4].mxu0 %v46_v3  ;;  %948 = vmatmul.mubr.f32.gmra.mrb[4].mxu1 %v54_v4 }
  0x4d   :  { %938 = vmatprep.mubr.f32.mxu0 %v47_v5  ;;  %950 = vmatprep.mubr.f32.mxu1 %v55_v6  ;;  %v637_v6 = vadd.s32 8, %v1313_v52 }
  0x50   :  { %939 = vmatmul.mubr.f32.gmra.mrb[6].mxu0 %v48_v7  ;;  %951 = vmatmul.mubr.f32.gmra.mrb[6].mxu1 %v56_v8  ;;  %v1331_v7 = vand.u32 127, %v635_v41 }
  0x52   :  { %vm690_vm3 = vcmp.eq.s32.totalorder %v637_v6, %v1331_v7  ;;  %vm689_vm5 = vcmp.eq.s32.totalorder %v1313_v52, %v1331_v7  ;;  %v1406_v6 = vadd.s32 40, %v1313_v52 }
  0x86   :  { %v238_v9 = vpop.permute.xlu0 %237 }
  0x87   :  { %v248_v11 = vpop.permute.xlu1 %247  ;;  %v321_v26 = vadd.f32 %v1290_v19, %v238_v9 }
  0x88   :  { %v323_v44 = vadd.f32 %v1290_v19, %v248_v11 }
  0x8a   :  { %v243_v10 = vpop.permute.xlu0 %242 }
  0x8b   :  { %v253_v13 = vpop.permute.xlu1 %252  ;;  %v322_v22 = vadd.f32 %v1290_v19, %v243_v10 }
  0x8c   :  { %v324_v51 = vadd.f32 %v1290_v19, %v253_v13 }
  0x8e   :  { %v258_v12 = vpop.permute.xlu0 %257 }
  0x8f   :  { %v325_v56 = vadd.f32 %v1290_v19, %v258_v12 }
  0x96   :  { %v268_v14 = vpop.permute.xlu0 %267  ;;  %v263_v15 = vpop.permute.xlu1 %262 }
  0x97   :  { %v326_v58 = vadd.f32 %v1290_v19, %v263_v15  ;;  %v1320_v59 = vadd.f32 %v1290_v19, %v268_v14 }
  0x9a   :  { %v278_v16 = vpop.permute.xlu0 %277  ;;  %v273_v17 = vpop.permute.xlu1 %272 }
  0x9b   :  { %v328_v62 = vadd.f32 %v1290_v19, %v273_v17  ;;  %v329_v63 = vadd.f32 %v1290_v19, %v278_v16 }
  0x9e   :  { %v288_v18 = vpop.permute.xlu0 %287  ;;  %v283_v28 = vpop.permute.xlu1 %282 }
  0x9f   :  { %v330_v0 = vadd.f32 %v1290_v19, %v283_v28  ;;  %v1328_v4 = vadd.f32 %v1290_v19, %v288_v18 }
  0xa2   :  { %v1294_v29 = vpop.permute.xlu0 %515  ;;  %v293_v46 = vpop.permute.xlu1 %292 }
  0xa6   :  { %v1308_v45 = vpop.permute.xlu0 %297  ;;  %v521_v5 = vpop.permute.xlu1 %520 }
  0xaa   :  { %v303_v1 = vpop.permute.xlu0 %302 }
 0x117   :  { %v931_v20 = vpop.f32.mrb[0].mxu0  ;;  %v943_v21 = vpop.f32.mrb[0].mxu1 }
 0x118   :  { %v338_v23 = vmul.f32 2.0, %v931_v20  ;;  %v139_v24 = vpop.f32.mrb[1].mxu0  ;;  %v179_v25 = vpop.f32.mrb[1].mxu1  ;;  %v346_v10 = vmul.f32 2.0, %v943_v21 }
 0x119   :  { %v337_v27 = vmul.f32 2.0, %v139_v24  ;;  %v345_v57 = vmul.f32 2.0, %v179_v25  ;;  %v308_v21 = vpop.permute.xlu0 %307 }
 0x11a   :  { %v354_v30 = vsub.f32 %v322_v22, %v338_v23 }
 0x11b   :  { %v353_v31 = vsub.f32 %v321_v26, %v337_v27  ;;  %v934_v32 = vpop.f32.mrb[2].mxu0  ;;  %v1296_v33 = vpop.f32.mrb[2].mxu1  ;;  %v361_v11 = vsub.f32 %v329_v63, %v345_v57  ;;  %v362_v27 = vsub.f32 %v330_v0, %v346_v10  ;;  %v1393_v63 = vadd.s32 32, %v1313_v52 }
 0x11c   :  { %v370_v34 = vmax.f32 %v354_v30, 0.0  ;;  %v149_v35 = vpop.f32.mrb[3].mxu0  ;;  %v1298_v36 = vpop.f32.mrb[3].mxu1  ;;  %v340_v47 = vmul.f32 2.0, %v934_v32  ;;  %v1418_v10 = vadd.s32 80, %v1313_v52 }
 0x11d   :  { %v1300_v37 = vmax.f32 %v353_v31, 0.0  ;;  %v339_v38 = vmul.f32 2.0, %v149_v35  ;;  %v1344_v26 = vpop.permute.xlu1 %525  ;;  %v347_v30 = vmul.f32 2.0, %v1298_v36  ;;  %v348_v36 = vmul.f32 2.0, %v1296_v33 }
 0x11e   :  { %1007 = vrsqrt.f32 %v370_v34  ;;  %v356_v60 = vsub.f32 %v324_v51, %v340_v47  ;;  %vm394_vm0 = vcmp.eq.f32.partialorder %v370_v34, inf  ;;  %vm396_vm1 = vcmp.eq.f32.partialorder %v370_v34, 0.0 }
 0x11f   :  { %v937_v39 = vpop.f32.mrb[4].mxu0  ;;  %v1302_v40 = vpop.f32.mrb[4].mxu1  ;;  %1009 = vrsqrt.f32 %v1300_v37  ;;  %v355_v48 = vsub.f32 %v323_v44, %v339_v38  ;;  %v397_v13 = vand.u32 2147483648, %v370_v34  ;;  %vm387_vm2 = vcmp.eq.f32.partialorder %v1300_v37, inf }
 0x120   :  { %v159_v42 = vpop.f32.mrb[5].mxu0  ;;  %v1305_v43 = vpop.f32.mrb[5].mxu1  ;;  %v342_v61 = vmul.f32 2.0, %v937_v39  ;;  %v1333_v14 = vmax.f32 %v356_v60, 0.0  ;;  %v390_v22 = vand.u32 2147483648, %v1300_v37  ;;  %vm389_vm4 = vcmp.eq.f32.partialorder %v1300_v37, 0.0 }
 0x121   :  { %v341_v53 = vmul.f32 2.0, %v159_v42  ;;  %v1325_v2 = vmax.f32 %v355_v48, 0.0  ;;  %v332_v38 = vadd.f32 %v1290_v19, %v293_v46  ;;  %v334_v44 = vadd.f32 %v1290_v19, %v303_v1  ;;  %v313_v48 = vpop.permute.xlu0 %312  ;;  %v1372_v33 = vpop.permute.xlu1 %530 }
 0x122   :  { %v358_v15 = vsub.f32 %v326_v58, %v342_v61  ;;  %v1364_v46 = vadd.f32 %v1290_v19, %v308_v21  ;;  %v1366_v47 = vmax.f32 %v362_v27, 0.0  ;;  %v363_v51 = vsub.f32 %v1328_v4, %v347_v30 }
 0x123   :  { %v940_v49 = vpop.f32.mrb[6].mxu0  ;;  %v1310_v50 = vpop.f32.mrb[6].mxu1  ;;  %v357_v8 = vsub.f32 %v325_v56, %v341_v53  ;;  %1011 = vrsqrt.f32 %v1325_v2  ;;  %v349_v56 = vmul.f32 2.0, %v1305_v43  ;;  %v364_v58 = vsub.f32 %v332_v38, %v348_v36 }
 0x124   :  { %v169_v54 = vpop.f32.mrb[7].mxu0  ;;  %v1315_v55 = vpop.f32.mrb[7].mxu1  ;;  %v344_v18 = vmul.f32 2.0, %v940_v49  ;;  %1013 = vrsqrt.f32 %v1333_v14  ;;  %v1382_v60 = vadd.s32 16, %v1313_v52  ;;  %v1396_v43 = vadd.s32 64, %v1313_v52 }
 0x125   :  { %v1339_v23 = vmax.f32 %v357_v8, 0.0  ;;  %v343_v42 = vmul.f32 2.0, %v169_v54  ;;  %v1375_v54 = vadd.f32 %v1290_v19, %v313_v48  ;;  %v1398_v0 = vmax.f32 %v363_v51, 0.0 }
 0x126   :  { %v360_v35 = vsub.f32 %v328_v62, %v344_v18  ;;  %v1386_v62 = vadd.s32 72, %v1313_v52  ;;  %v350_v1 = vmul.f32 2.0, %v1302_v40  ;;  %v1409_v8 = vadd.s32 48, %v1313_v52 }
 0x127   :  { %1015 = vrsqrt.f32 %v1339_v23  ;;  %v359_v61 = vsub.f32 %v1320_v59, %v343_v42  ;;  %v1415_v40 = vadd.s32 56, %v1313_v52  ;;  %vm401_vm6 = vcmp.eq.f32.partialorder %v1325_v2, inf }
 0x128   :  { %v1008_v3 = vpop.eup %1007  ;;  %v1370_v53 = vmax.f32 %v360_v35, 0.0  ;;  %v366_v18 = vsub.f32 %v334_v44, %v350_v1  ;;  %v404_v27 = vand.u32 2147483648, %v1325_v2  ;;  %vm408_vm8 = vcmp.eq.f32.partialorder %v1333_v14, inf }
 0x129   :  { %v393_v9 = vmul.f32 %v1008_v3, %v370_v34  ;;  %v1010_v12 = vpop.eup %1009  ;;  %v1402_v59 = vmax.f32 %v359_v61, 0.0  ;;  %vm410_vm9 = vcmp.eq.f32.partialorder %v1333_v14, 0.0  ;;  %vm403_vm10 = vcmp.eq.f32.partialorder %v1325_v2, 0.0 }
 0x12a   :  { %v386_v17 = vmul.f32 %v1010_v12, %v1300_v37  ;;  %v1420_v12 = vpop.permute.xlu1 %535  ;;  %vm691_vm11 = vcmp.eq.s32.totalorder %v1382_v60, %v1331_v7  ;;  %v1449_v35 = vmax.f32 %v366_v18, 0.0  ;;  %vm450_vm12 = vcmp.eq.f32.partialorder %v1366_v47, inf }
 0x12b   :  { %v395_v16 = vsel %vm394_vm0, %v370_v34, %v393_v9  ;;  %v1349_v34 = vmax.f32 %v358_v15, 0.0  ;;  %v1411_v9 = vmax.f32 %v364_v58, 0.0  ;;  %v1425_v15 = vadd.s32 88, %v1313_v52  ;;  %v546_v58 = vpop.permute.xlu0 %545 }
 0x12c   :  { %v398_v20 = vsel %vm396_vm1, %v397_v13, %v395_v16  ;;  %v388_v25 = vsel %vm387_vm2, %v1300_v37, %v386_v17  ;;  %v1354_v37 = vmax.f32 %v361_v11, 0.0  ;;  %v351_v13 = vmul.f32 2.0, %v1315_v55 }
 0x12d   :  { %v594_v24 = vsub.f32 %v521_v5, %v398_v20  ;;  %v391_v28 = vsel %vm389_vm4, %v390_v22, %v388_v25  ;;  %1017 = vrsqrt.f32 %v1349_v34  ;;  %v1012_v57 = vpop.eup %1011  ;;  %v1428_v16 = vadd.s32 96, %v1313_v52 }
 0x12e   :  { %v593_v32 = vsub.f32 %v1294_v29, %v391_v28  ;;  %v333_v29 = vadd.f32 %v1290_v19, %v1308_v45  ;;  %1019 = vrsqrt.f32 %v1354_v37  ;;  %v1390_v19 = vadd.s32 24, %v1313_v52  ;;  %v1014_v3 = vpop.eup %1013 }
 0x12f   :  { %v610_v31 = vmax.f32 %v594_v24, 0.0  ;;  %1021 = vrsqrt.f32 %v1366_v47  ;;  %v400_v4 = vmul.f32 %v1012_v57, %v1325_v2  ;;  %v407_v17 = vmul.f32 %v1014_v3, %v1333_v14 }
 0x130   :  { %v609_v41 = vmax.f32 %v593_v32, 0.0  ;;  %1023 = vrsqrt.f32 %v1370_v53  ;;  %v365_v5 = vsub.f32 %v333_v29, %v349_v56  ;;  %v352_v20 = vmul.f32 2.0, %v1310_v50 }
 0x131   :  { %v706_v39 = vsel %vm690_vm3, 0.0, %v610_v31  ;;  %1025 = vrsqrt.f32 %v1402_v59  ;;  %v1016_v11 = vpop.eup %1015  ;;  %v453_v22 = vand.u32 2147483648, %v1366_v47  ;;  %vm443_vm7 = vcmp.eq.f32.partialorder %v1354_v37, inf }
 0x132   :  { %v705_v49 = vsel %vm689_vm5, 0.0, %v609_v41  ;;  %1027 = vrsqrt.f32 %v1398_v0  ;;  %v402_v21 = vsel %vm401_vm6, %v1325_v2, %v400_v4  ;;  %v1436_v55 = vmax.f32 %v365_v5, 0.0  ;;  %v1452_v41 = vpop.permute.xlu1 %540 }
 0x133   :  { %v1377_v45 = vadd.f32 %v706_v39, %v705_v49  ;;  %v446_v25 = vand.u32 2147483648, %v1354_v37  ;;  %1029 = vrsqrt.f32 %v1411_v9  ;;  %v414_v28 = vmul.f32 %v1016_v11, %v1339_v23 }
 0x134   :  { %v367_v50 = vsub.f32 %v1364_v46, %v351_v13  ;;  %v409_v31 = vsel %vm408_vm8, %v1333_v14, %v407_v17  ;;  %v405_v32 = vsel %vm403_vm10, %v404_v27, %v402_v21  ;;  %v368_v38 = vsub.f32 %v1375_v54, %v352_v20 }
 0x135   :  { %v411_v36 = vand.u32 2147483648, %v1333_v14  ;;  %vm415_vm13 = vcmp.eq.f32.partialorder %v1339_v23, inf  ;;  %1031 = vrsqrt.f32 %v1436_v55  ;;  %vm422_vm14 = vcmp.eq.f32.partialorder %v1349_v34, inf }
 0x136   :  { %vm424_vm15 = vcmp.eq.f32.partialorder %v1349_v34, 0.0  ;;  %v416_v44 = vsel %vm415_vm13, %v1339_v23, %v414_v28  ;;  %v595_v48 = vsub.f32 %v1344_v26, %v405_v32  ;;  %v418_v49 = vand.u32 2147483648, %v1339_v23  ;;  %v1488_v11 = vpop.permute.xlu1 %550 }
 0x137   :  { %v1018_v24 = vpop.eup %1017  ;;  %v412_v46 = vsel %vm410_vm9, %v411_v36, %v409_v31  ;;  %v1467_v51 = vmax.f32 %v367_v50, 0.0  ;;  %vm445_vm0 = vcmp.eq.f32.partialorder %v1354_v37, 0.0  ;;  %1033 = vrsqrt.f32 %v1449_v35  ;;  %v556_v50 = vpop.permute.xlu0 %555 }
 0x138   :  { %v1020_v30 = vpop.eup %1019  ;;  %v421_v2 = vmul.f32 %v1018_v24, %v1349_v34  ;;  %vm417_vm1 = vcmp.eq.f32.partialorder %v1339_v23, 0.0  ;;  %v1473_v57 = vmax.f32 %v368_v38, 0.0  ;;  %vm692_vm2 = vcmp.eq.s32.totalorder %v1390_v19, %v1331_v7 }
 0x139   :  { %v1022_v39 = vpop.eup %1021  ;;  %v442_v29 = vmul.f32 %v1020_v30, %v1354_v37  ;;  %v419_v61 = vsel %vm417_vm1, %v418_v49, %v416_v44  ;;  %vm693_vm3 = vcmp.eq.s32.totalorder %v1393_v63, %v1331_v7  ;;  %v596_v4 = vsub.f32 %v1372_v33, %v412_v46 }
 0x13a   :  { %v1024_v42 = vpop.eup %1023  ;;  %v449_v56 = vmul.f32 %v1022_v39, %v1366_v47  ;;  %v423_v14 = vsel %vm422_vm14, %v1349_v34, %v421_v2  ;;  %v425_v5 = vand.u32 2147483648, %v1349_v34  ;;  %vm429_vm4 = vcmp.eq.f32.partialorder %v1402_v59, inf  ;;  %v561_v2 = vpop.permute.xlu1 %560 }
 0x13b   :  { %v1026_v54 = vpop.eup %1025  ;;  %v435_v26 = vmul.f32 %v1024_v42, %v1370_v53  ;;  %v444_v23 = vsel %vm443_vm7, %v1354_v37, %v442_v29  ;;  %v611_v13 = vmax.f32 %v595_v48, 0.0  ;;  %v432_v18 = vand.u32 2147483648, %v1402_v59 }
 0x13c   :  { %v428_v1 = vmul.f32 %v1026_v54, %v1402_v59  ;;  %v1028_v3 = vpop.eup %1027  ;;  %1035 = vrsqrt.f32 %v1467_v51  ;;  %v426_v21 = vsel %vm424_vm15, %v425_v5, %v423_v14  ;;  %v597_v24 = vsub.f32 %v1420_v12, %v419_v61 }
 0x13d   :  { %v1030_v20 = vpop.eup %1029  ;;  %vm436_vm5 = vcmp.eq.f32.partialorder %v1370_v53, inf  ;;  %vm431_vm6 = vcmp.eq.f32.partialorder %v1402_v59, 0.0  ;;  %v456_v33 = vmul.f32 %v1028_v3, %v1398_v0  ;;  %1037 = vrsqrt.f32 %v1473_v57 }
 0x13e   :  { %v430_v17 = vsel %vm429_vm4, %v1402_v59, %v428_v1  ;;  %v437_v27 = vsel %vm436_vm5, %v1370_v53, %v435_v26  ;;  %vm694_vm7 = vcmp.eq.s32.totalorder %v1406_v6, %v1331_v7  ;;  %vm695_vm8 = vcmp.eq.s32.totalorder %v1409_v8, %v1331_v7  ;;  %v571_v63 = vpop.permute.xlu1 %570 }
 0x13f   :  { %v433_v28 = vsel %vm431_vm6, %v432_v18, %v430_v17  ;;  %v612_v34 = vmax.f32 %v596_v4, 0.0  ;;  %vm438_vm9 = vcmp.eq.f32.partialorder %v1370_v53, 0.0  ;;  %v439_v12 = vand.u32 2147483648, %v1370_v53  ;;  %v1032_v30 = vpop.eup %1031 }
 0x140   :  { %v451_v59 = vsel %vm450_vm12, %v1366_v47, %v449_v56  ;;  %v707_v31 = vsel %vm691_vm11, 0.0, %v611_v13  ;;  %v598_v32 = vsub.f32 %v1452_v41, %v426_v21  ;;  %vm452_vm10 = vcmp.eq.f32.partialorder %v1366_v47, 0.0 }
 0x141   :  { %v463_v38 = vmul.f32 %v1030_v20, %v1411_v9  ;;  %v613_v39 = vmax.f32 %v597_v24, 0.0  ;;  %v440_v36 = vsel %vm438_vm9, %v439_v12, %v437_v27  ;;  %vm457_vm13 = vcmp.eq.f32.partialorder %v1398_v0, inf  ;;  %v1034_v29 = vpop.eup %1033 }
 0x142   :  { %v599_v53 = vsub.f32 %v546_v58, %v433_v28  ;;  %v447_v42 = vsel %vm445_vm0, %v446_v25, %v444_v23  ;;  %v454_v60 = vsel %vm452_vm10, %v453_v22, %v451_v59  ;;  %v458_v41 = vsel %vm457_vm13, %v1398_v0, %v456_v33  ;;  %v566_v58 = vpop.permute.xlu0 %565 }
 0x143   :  { %vm696_vm11 = vcmp.eq.s32.totalorder %v1415_v40, %v1331_v7  ;;  %vm459_vm12 = vcmp.eq.f32.partialorder %v1398_v0, 0.0  ;;  %v460_v44 = vand.u32 2147483648, %v1398_v0  ;;  %vm464_vm14 = vcmp.eq.f32.partialorder %v1411_v9, inf }
 0x144   :  { %v470_v46 = vmul.f32 %v1032_v30, %v1436_v55  ;;  %v465_v37 = vsel %vm464_vm14, %v1411_v9, %v463_v38  ;;  %v467_v25 = vand.u32 2147483648, %v1411_v9  ;;  %v600_v47 = vsub.f32 %v1488_v11, %v440_v36 }
 0x145   :  { %vm697_vm15 = vcmp.eq.s32.totalorder %v1396_v43, %v1331_v7  ;;  %v824_v22 = vadd.f32 %v1377_v45, %v707_v31  ;;  %v614_v48 = vmax.f32 %v598_v32, 0.0  ;;  %v615_v49 = vmax.f32 %v599_v53, 0.0 }
 0x146   :  { %v708_v0 = vsel %vm692_vm2, 0.0, %v612_v34  ;;  %v709_v54 = vsel %vm693_vm3, 0.0, %v613_v39  ;;  %v1036_v56 = vpop.eup %1035  ;;  %v461_v14 = vsel %vm459_vm12, %v460_v44, %v458_v41  ;;  %vm466_vm0 = vcmp.eq.f32.partialorder %v1411_v9, 0.0  ;;  %v576_v28 = vpop.permute.xlu0 %575 }
 0x147   :  { %vm471_vm1 = vcmp.eq.f32.partialorder %v1436_v55, inf  ;;  %vm698_vm4 = vcmp.eq.s32.totalorder %v1386_v62, %v1331_v7  ;;  %v825_v45 = vadd.f32 %v824_v22, %v708_v0  ;;  %v468_v61 = vsel %vm466_vm0, %v467_v25, %v465_v37  ;;  %v1038_v3 = vpop.eup %1037 }
 0x148   :  { %v472_v26 = vsel %vm471_vm1, %v1436_v55, %v470_v46  ;;  %v477_v19 = vmul.f32 %v1034_v29, %v1449_v35  ;;  %v601_v1 = vsub.f32 %v556_v50, %v447_v42  ;;  %vm473_vm2 = vcmp.eq.f32.partialorder %v1436_v55, 0.0  ;;  %v581_v50 = vpop.permute.xlu1 %580 }
 0x149   :  { %v474_v23 = vand.u32 2147483648, %v1436_v55  ;;  %v602_v4 = vsub.f32 %v561_v2, %v454_v60  ;;  %v826_v9 = vadd.f32 %v825_v45, %v709_v54  ;;  %v484_v5 = vmul.f32 %v1036_v56, %v1467_v51 }
 0x14a   :  { %v616_v11 = vmax.f32 %v600_v47, 0.0  ;;  %v710_v13 = vsel %vm694_vm7, 0.0, %v614_v48  ;;  %v711_v17 = vsel %vm695_vm8, 0.0, %v615_v49  ;;  %vm478_vm3 = vcmp.eq.f32.partialorder %v1449_v35, inf  ;;  %v586_v41 = vpop.permute.xlu0 %585 }
 0x14b   :  { %vm480_vm5 = vcmp.eq.f32.partialorder %v1449_v35, 0.0  ;;  %v481_v18 = vand.u32 2147483648, %v1449_v35  ;;  %v827_v20 = vadd.f32 %v826_v9, %v710_v13  ;;  %v479_v21 = vsel %vm478_vm3, %v1449_v35, %v477_v19 }
 0x14c   :  { %v491_v24 = vmul.f32 %v1038_v3, %v1473_v57  ;;  %v603_v33 = vsub.f32 %v566_v58, %v461_v14  ;;  %v617_v27 = vmax.f32 %v601_v1, 0.0  ;;  %v475_v6 = vsel %vm473_vm2, %v474_v23, %v472_v26  ;;  %v591_v25 = vpop.permute.xlu1 %590 }
 0x14d   :  { %vm485_vm6 = vcmp.eq.f32.partialorder %v1467_v51, inf  ;;  %vm487_vm7 = vcmp.eq.f32.partialorder %v1467_v51, 0.0  ;;  %v828_v8 = vadd.f32 %v827_v20, %v711_v17  ;;  %v604_v12 = vsub.f32 %v571_v63, %v468_v61 }
 0x14e   :  { %v486_v34 = vsel %vm485_vm6, %v1467_v51, %v484_v5  ;;  %v618_v59 = vmax.f32 %v602_v4, 0.0  ;;  %v712_v30 = vsel %vm696_vm11, 0.0, %v616_v11  ;;  %v482_v31 = vsel %vm480_vm5, %v481_v18, %v479_v21 }
 0x14f   :  { %v488_v55 = vand.u32 2147483648, %v1467_v51  ;;  %vm492_vm8 = vcmp.eq.f32.partialorder %v1473_v57, inf  ;;  %v829_v32 = vadd.f32 %v828_v8, %v712_v30  ;;  %v605_v39 = vsub.f32 %v576_v28, %v475_v6 }
 0x150   :  { %v493_v38 = vsel %vm492_vm8, %v1473_v57, %v491_v24  ;;  %v619_v36 = vmax.f32 %v603_v33, 0.0  ;;  %v713_v53 = vsel %vm697_vm15, 0.0, %v617_v27  ;;  %v495_v40 = vand.u32 2147483648, %v1473_v57 }
 0x151   :  { %v489_v2 = vsel %vm487_vm7, %v488_v55, %v486_v34  ;;  %vm699_vm9 = vcmp.eq.s32.totalorder %v1418_v10, %v1331_v7  ;;  %v830_v35 = vadd.f32 %v829_v32, %v713_v53  ;;  %vm494_vm10 = vcmp.eq.f32.partialorder %v1473_v57, 0.0 }
 0x152   :  { %v606_v51 = vsub.f32 %v581_v50, %v482_v31  ;;  %v620_v42 = vmax.f32 %v604_v12, 0.0  ;;  %v714_v60 = vsel %vm698_vm4, 0.0, %v618_v59  ;;  %v496_v29 = vsel %vm494_vm10, %v495_v40, %v493_v38 }
 0x153   :  { %v649_v43 = vadd.s32 104, %v1313_v52  ;;  %vm700_vm13 = vcmp.eq.s32.totalorder %v1425_v15, %v1331_v7  ;;  %v831_v44 = vadd.f32 %v830_v35, %v714_v60  ;;  %v607_v46 = vsub.f32 %v586_v41, %v489_v2 }
 0x154   :  { %v621_v37 = vmax.f32 %v605_v39, 0.0  ;;  %v715_v10 = vsel %vm699_vm9, 0.0, %v619_v36  ;;  %v650_v57 = vadd.s32 112, %v1313_v52  ;;  %vm701_vm11 = vcmp.eq.s32.totalorder %v1428_v16, %v1331_v7 }
 0x155   :  { %v832_v47 = vadd.f32 %v831_v44, %v715_v10  ;;  %v608_v62 = vsub.f32 %v591_v25, %v496_v29  ;;  %v622_v22 = vmax.f32 %v606_v51, 0.0  ;;  %v716_v48 = vsel %vm700_vm13, 0.0, %v620_v42 }
 0x156   :  { %v651_v49 = vadd.s32 120, %v1313_v52  ;;  %vm702_vm12 = vcmp.eq.s32.totalorder %v649_v43, %v1331_v7  ;;  %v623_v15 = vmax.f32 %v607_v46, 0.0  ;;  %v717_v54 = vsel %vm701_vm11, 0.0, %v621_v37 }
 0x157   :  { %v833_v0 = vadd.f32 %v832_v47, %v716_v48  ;;  %vm703_vm14 = vcmp.eq.s32.totalorder %v650_v57, %v1331_v7  ;;  %v624_v58 = vmax.f32 %v608_v62, 0.0  ;;  %v718_v14 = vsel %vm702_vm12, 0.0, %v622_v22 }
 0x158   :  { %vm704_vm15 = vcmp.eq.s32.totalorder %v651_v49, %v1331_v7  ;;  %v719_v16 = vsel %vm703_vm14, 0.0, %v623_v15 }
 0x159   :  { %v834_v56 = vadd.f32 %v833_v0, %v717_v54  ;;  %v720_v26 = vsel %vm704_vm15, 0.0, %v624_v58 }
 0x15b   :  { %v835_v45 = vadd.f32 %v834_v56, %v718_v14 }
 0x15d   :  { %v836_v61 = vadd.f32 %v835_v45, %v719_v16 }
 0x15f   :  { %v837_v19 = vadd.f32 %v836_v61, %v720_v26 }
 0x161   :  { %838 = vadd.xlane.f32.xlu0 %v837_v19 }
 0x1ee   :  { %v839_v1 = vpop.xlane.xlu0 %838 }
 0x1ef   :  { %v840_v52 = vrot.slane %v839_v1, 4 }
 0x1f1   :  { %v841_v3 = vadd.f32 %v840_v52, %v839_v1 }
 0x1f3   :  { %v842_v63 = vrot.slane %v841_v3, 2 }
 0x1f5   :  { %v843_v23 = vadd.f32 %v842_v63, %v841_v3 }
 0x1f7   :  { %v844_v4 = vrot.slane %v843_v23, 1 }
 0x1f9   :  { %v845_v9 = vadd.f32 %v844_v4, %v843_v23 }
 0x1fb   :  { %1001 = vpush %v845_v9 }
 0x22c   :  { %s1002_s18 = spop %1001 }
 0x22d   :  { %v847_v5 = vstv %s1002_s18 }
 0x22e   :  { %849 = vst [vmem:[#allocation3] sm:$0xff] %v847_v5 }
 0x22f   :  { %1050 = shalt.err (!%p1047_p4)
}
 0x230   :  { %s1051_s22 = scalar_lea.hbm %s1612_s5, 128 }
 0x231   :  { %p1052_p5 = scmp.ne.s32.totalorder %s1612_s5, %s1051_s22  ;;  %p1055_p6 = scmp.lt.u32.totalorder %s1051_s22, %s1612_s5 }
 0x233   :  { %p1057_p7 = pnand %p1055_p6, %p1052_p5 }
 0x235   :  { %1060 = shalt.err (!%p1057_p7)
}
 0x236   :  { %859 = dma.vmem_to_hbm [thread:$0]  %s857_s2, 128, %s1612_s5, [#allocation4]  }
 0x237   :  { %1061 = dma.done.wait [#allocation4], 128  }
 0x238   :  { %1062 = vsyncadd [#allocation4], 4294967168 }
 0x239   :  { %863 = vsyncpa [#allocation4], 1 }

</bundles_post_ra>
